<compile_context>
chip_gen: v5e
topology: v5e:2x2
jax: 0.10.0
libtpu: 0.0.40
codegen_flags: <defaults>
</compile_context>

<pallas_src>
import jax
import jax.numpy as jnp
from jax.experimental import pallas as pl
from jax.experimental.pallas import tpu as pltpu


# ----------------------------- device / tiling helpers -----------------------------

def _round_up(x, m):
    return (x + m - 1) // m * m


def _vmem_capacity_bytes():
    try:
        cap = int(pltpu.get_tpu_info().vmem_capacity_bytes)
        if cap > 0:
            return cap
    except Exception:
        pass
    return 128 * 2**20


def _pick_row_tiles(N, Ho, Wo, target_rows):
    """Pick (nb, th): nb images x th output rows per tile.

    Constraints: nb | N, th | Ho, and nb > 1 => th == Ho so every (M, Cp) output block
    is a contiguous row range.  Prefer tm % 16 == 0 (bf16 sublane tiling), then
    tm % 8 == 0; otherwise fall back to the full-array block (always layout-legal).
    """
    M = N * Ho * Wo
    target = max(target_rows, Wo)
    cands = [(1, th) for th in range(1, Ho + 1) if Ho % th == 0]
    cands += [(nb, Ho) for nb in range(2, N + 1) if N % nb == 0]
    best = None
    for nb, th in cands:
        tm = nb * th * Wo
        if tm > target:
            continue
        if tm == M or tm % 16 == 0:
            align = 2
        elif tm % 8 == 0:
            align = 1
        else:
            align = 0
        key = (align, tm)
        if best is None or key > best[0]:
            best = (key, nb, th)
    if best is None or best[0][0] == 0:
        return N, Ho            # full block == array dims: always legal (down7/down8)
    return best[1], best[2]


def _pick_k_tile(K, target):
    if K <= target:
        return K
    d = target - target % 128
    while d >= 128:
        if K % d == 0:
            return d
        d -= 128
    return K


def _pick_channel_tile(Cp, n_row_tiles, nK):
    # Split channels only when the row axis cannot feed two TensorCores (v7x) and the
    # K axis is not grid-tiled (so the input window block is never re-fetched per c).
    if n_row_tiles >= 2 or nK != 1 or Cp < 256 or Cp % 256 != 0:
        return Cp
    return Cp // 2


def _pick_rows_tile_1d(M, target):
    best = None
    for d in range(min(M, target), 0, -1):
        if M % d:
            continue
        if d % 16 == 0:
            return d
        if best is None and (d % 8 == 0 or d == M):
            best = d
    return best if best is not None else M


# ------------------------------------ kernels ---------------------------------------

def _make_conv_stats_kernel(nb, th, Wo, tk, tc, nK):
    """Conv(4x4, s2, p1) as a 2x2/s1 conv over a space-to-depth(2) input window.

    Refs per grid step (n: batch block, t: row tile, c: channel tile, k: K tile):
      xmain_ref : (nb, th, Wo+1, tk) bf16  window rows 0..th-1 (k-th slice of 4*Cin)
      xhalo_ref : (nb, 1,  Wo+1, tk) bf16  per-image halo row (window row th)
      w_ref     : (2, 2, tk, tc)     bf16  weight block
      y_ref     : (tm, tc)           bf16  conv tile (written once, at the last k)
      stats_ref : (2, tc)            f32   per-tile (sum, mean-shifted sum of squares)
      acc_ref   : (tm, tc)           f32   VMEM scratch accumulator (only when nK > 1)
    """
    tm = nb * th * Wo
    inv_tm = 1.0 / tm

    def kernel(xmain_ref, xhalo_ref, w_ref, y_ref, stats_ref, *scratch):
        main = xmain_ref[...]                                   # (nb, th, Wo+1, tk)
        halo = xhalo_ref[...]                                   # (nb, 1,  Wo+1, tk)
        # rows 1..th of the 2x2-conv window: each image's own halo row appended.
        if th == 1:
            shifted = halo
        else:
            shifted = jnp.concatenate([main[:, 1:], halo], axis=1)

        def tap(rows, dw):                                      # on-chip im2col slice
            # TODO(synk): the dw=1 slice crosses the (8,128) sublane tiling; a
            # pltpu.roll-based shift (XLU) or folding both dh taps into one fat
            # (tm, 2*tk) matmul could shave the copy/drain overhead further.
            return rows[:, :, dw:dw + Wo, :].reshape(tm, tk)

        acc = jnp.dot(tap(main, 0), w_ref[0, 0], preferred_element_type=jnp.float32)
        acc += jnp.dot(tap(main, 1), w_ref[0, 1], preferred_element_type=jnp.float32)
        acc += jnp.dot(tap(shifted, 0), w_ref[1, 0], preferred_element_type=jnp.float32)
        acc += jnp.dot(tap(shifted, 1), w_ref[1, 1], preferred_element_type=jnp.float32)

        def finalize(y):
            # per-tile partials for a Chan-style (mean-shifted) variance merge in JAX
            s = jnp.sum(y, axis=0, keepdims=True)               # (1, tc) f32
            d = y - s * inv_tm
            stats_ref[0:1, :] = s
            stats_ref[1:2, :] = jnp.sum(d * d, axis=0, keepdims=True)
            y_ref[...] = y.astype(y_ref.dtype)                  # single bf16 writeback

        if nK == 1:
            finalize(acc)
        else:
            k = pl.program_id(3)
            acc_ref = scratch[0]

            @pl.when(k == 0)
            def _():
                acc_ref[...] = acc

            @pl.when(k > 0)
            def _():
                acc_ref[...] += acc

            @pl.when(k == nK - 1)
            def _():
                finalize(acc_ref[...])

    return kernel


def _scale_shift_lrelu_kernel(x_ref, scale_ref, shift_ref, o_ref):
    """Fused per-channel scale/shift (folded BatchNorm or bias) + LeakyReLU(0.2)."""
    y = x_ref[...].astype(jnp.float32) * scale_ref[...] + shift_ref[...]
    o_ref[...] = jnp.where(y >= 0, y, 0.2 * y).astype(o_ref.dtype)


# -------------------------------------- layer ----------------------------------------

def unet_down_forward_nhwc(x_nhwc, weight, bias, gamma, beta, *, eps=1e-5,
                           batch_norm=True, out_dtype=jnp.bfloat16,
                           row_tile_rows=None, k_tile_target=None,
                           bn_tile_rows=None, return_padded=False):
    N, H, W, Cin = x_nhwc.shape
    Cout = weight.shape[0]
    assert H % 2 == 0 and W % 2 == 0, "kernel=4, stride=2, pad=1 assumes even H, W"
    Ho, Wo = H // 2, W // 2
    K = 4 * Cin
    Cp = _round_up(Cout, 128)            # lane-dense output channels
    M = N * Ho * Wo
    conv_dtype = jnp.bfloat16            # HBM-bound (M, Cp) intermediates in bf16

    # ---- chip-aware tile targets & VMEM budget (v5e/v6e: 128 MiB; v7x: 64 MiB) ----
    cap = _vmem_capacity_bytes()
    small_vmem = cap <= 96 * 2**20
    if k_tile_target is None:
        k_tile_target = 1024 if small_vmem else 2048
    if row_tile_rows is None:
        row_tile_rows = 256 if small_vmem else 512
    if bn_tile_rows is None:
        bytes_per_row = Cp * (jnp.dtype(conv_dtype).itemsize + jnp.dtype(out_dtype).itemsize)
        budget = (4 if small_vmem else 8) * 2**20
        bn_tile_rows = max(16, min(4096, budget // max(bytes_per_row, 1)))

    # ---- glue: one ~1x pass over the input (no 16x im2col, no halo concat in HBM) ----
    # pad + space-to-depth(2): xr[n, r, s, (ph*2+pw)*Cin + c] = xpad[n, 2r+ph, 2s+pw, c]
    xpad = jnp.pad(x_nhwc.astype(conv_dtype), ((0, 0), (1, 1), (1, 1), (0, 0)))
    xr = xpad.reshape(N, Ho + 1, 2, Wo + 1, 2, Cin)
    xr = xr.transpose(0, 1, 3, 2, 4, 5).reshape(N, Ho + 1, Wo + 1, K)

    # weight (Cout, Cin, 4, 4) -> (dh, dw, (ph, pw, Cin), Cout padded to Cp), bf16
    wt = jnp.transpose(weight, (2, 3, 1, 0)).reshape(2, 2, 2, 2, Cin, Cout)
    wblk = wt.transpose(0, 2, 1, 3, 4, 5).reshape(2, 2, K, Cout)
    wblk = jnp.pad(wblk, ((0, 0), (0, 0), (0, 0), (0, Cp - Cout))).astype(jnp.bfloat16)

    # ---- tiling ----
    nb, th = _pick_row_tiles(N, Ho, Wo, row_tile_rows)   # nb images x th output rows
    nrt = Ho // th
    nN = N // nb
    T = nN * nrt                                         # row tiles (megacore-parallel)
    tm = nb * th * Wo
    tk = _pick_k_tile(K, k_tile_target)
    nK = K // tk
    tc = _pick_channel_tile(Cp, T, nK)
    nC = Cp // tc

    # per-row-tile halo rows: xhalo[n, t] = xr[n, (t+1)*th]   (only 1/th of input bytes)
    xhalo = xr[:, th::th, :, :]                          # (N, nrt, Wo+1, K)

    # ---- honest VMEM estimate -> scoped limit, capped at ~72% of physical VMEM ----
    win_b = nb * th * (Wo + 1) * tk * 2
    halo_b = nb * (Wo + 1) * tk * 2
    w_b = 4 * tk * tc * 2
    y_b = tm * tc * jnp.dtype(conv_dtype).itemsize
    st_b = 2 * tc * 4
    acc_b = tm * tc * 4 if nK > 1 else 0
    work_b = win_b + 2 * tm * tk * 2 + tm * tc * 4       # shifted + live tap copies + f32 acc
    est = 2 * (win_b + halo_b + w_b + y_b + st_b) + acc_b + work_b
    vmem_limit = min(int(cap * 0.72), max(32 * 2**20, int(1.5 * est) + 8 * 2**20))

    conv_out, stats = pl.pallas_call(
        _make_conv_stats_kernel(nb, th, Wo, tk, tc, nK),
        out_shape=(jax.ShapeDtypeStruct((M, Cp), conv_dtype),
                   jax.ShapeDtypeStruct((T, 2, Cp), jnp.float32)),
        grid_spec=pltpu.PrefetchScalarGridSpec(
            num_scalar_prefetch=0,
            grid=(nN, nrt, nC, nK),
            in_specs=[
                pl.BlockSpec((nb, th, Wo + 1, tk), lambda n, t, c, k: (n, t, 0, k)),
                pl.BlockSpec((nb, 1, Wo + 1, tk), lambda n, t, c, k: (n, t, 0, k)),
                # TODO(synk): single-buffer this (constant-index when nK==1) weight block
                # via pipeline_mode=pl.Buffered(1) once the main pipeline honors it.
                pl.BlockSpec((2, 2, tk, tc), lambda n, t, c, k: (0, 0, k, c)),
            ],
            out_specs=(
                pl.BlockSpec((tm, tc), lambda n, t, c, k: (n * nrt + t, c)),
                pl.BlockSpec((None, 2, tc), lambda n, t, c, k: (n * nrt + t, 0, c)),
            ),
            scratch_shapes=([pltpu.VMEM((tm, tc), jnp.float32)] if nK > 1 else [])),
        compiler_params=pltpu.CompilerParams(
            dimension_semantics=("parallel", "parallel", "parallel", "arbitrary"),
            vmem_limit_bytes=vmem_limit),
        cost_estimate=pl.CostEstimate(
            flops=2 * M * K * Cp,
            transcendentals=0,
            bytes_accessed=int(2 * (xr.size + xhalo.size + T * wblk.size)
                               + jnp.dtype(conv_dtype).itemsize * M * Cp
                               + 4 * T * 2 * Cp)),
    )(xr, xhalo, wblk)

    # ---- fold BatchNorm (training-mode batch stats) / bias into scale+shift ----
    tile_sum = stats[:, 0, :]                            # (T, Cp) f32
    tile_m2 = stats[:, 1, :]
    if batch_norm:
        # conv bias cancels exactly under batch statistics -> never added.
        sum_c = jnp.sum(tile_sum, axis=0)
        mean = sum_c / M
        # Chan merge of per-tile mean-shifted second moments (all tiles have tm rows).
        m2 = jnp.sum(tile_m2, axis=0) + jnp.sum((tile_sum - tm * mean) ** 2, axis=0) / tm
        var = jnp.maximum(m2 / M, 0.0)                   # biased: BN training mode
        inv_std = jax.lax.rsqrt(var + eps)
        gamma_p = jnp.pad(gamma.astype(jnp.float32), (0, Cp - Cout))
        beta_p = jnp.pad(beta.astype(jnp.float32), (0, Cp - Cout))
        scale = gamma_p * inv_std
        shift = beta_p - mean * scale
    else:
        scale = jnp.ones((Cp,), jnp.float32)
        shift = jnp.pad(bias.astype(jnp.float32), (0, Cp - Cout))
    scale = scale.reshape(1, Cp)
    shift = shift.reshape(1, Cp)

    # ---- fused (scale*x + shift) + LeakyReLU(0.2): mem-bound pass, aliased in place ----
    # TODO(synk): in a stacked GeneratorUNet this pass should be fused into the next
    # layer's conv kernel (scale/shift as (1, Cp) operands) to drop one full HBM pass.
    tm2 = _pick_rows_tile_1d(M, bn_tile_rows)
    alias = {0: 0} if jnp.dtype(out_dtype) == jnp.dtype(conv_dtype) else {}
    est2 = 2 * tm2 * Cp * (jnp.dtype(conv_dtype).itemsize
                           + jnp.dtype(out_dtype).itemsize) + 4 * 4 * Cp
    vmem_limit2 = min(int(cap * 0.72), max(32 * 2**20, 2 * est2))
    y = pl.pallas_call(
        _scale_shift_lrelu_kernel,
        out_shape=jax.ShapeDtypeStruct((M, Cp), out_dtype),
        grid_spec=pltpu.PrefetchScalarGridSpec(
            num_scalar_prefetch=0,
            grid=(M // tm2,),
            in_specs=[pl.BlockSpec((tm2, Cp), lambda i: (i, 0)),
                      pl.BlockSpec((1, Cp), lambda i: (0, 0)),
                      pl.BlockSpec((1, Cp), lambda i: (0, 0))],
            out_specs=pl.BlockSpec((tm2, Cp), lambda i: (i, 0))),
        compiler_params=pltpu.CompilerParams(
            dimension_semantics=("parallel",),
            vmem_limit_bytes=vmem_limit2),
        cost_estimate=pl.CostEstimate(
            flops=4 * M * Cp,
            transcendentals=0,
            bytes_accessed=int(M * Cp * (jnp.dtype(conv_dtype).itemsize
                                         + jnp.dtype(out_dtype).itemsize) + 8 * Cp)),
        input_output_aliases=alias,
    )(conv_out, scale, shift)

    y = y.reshape(N, Ho, Wo, Cp)
    if return_padded:
        return y                 # stacked layers: keep Cp-padded channels, un-pad at the end
    return y[..., :Cout]


def unet_down_forward(x_nchw, weight, bias, gamma, beta, *, eps=1e-5,
                      batch_norm=True, out_dtype=jnp.bfloat16, **kw):
    # NCHW only at the PyTorch-facing boundary; stacked layers should stay in NHWC/bf16.
    x = jnp.transpose(x_nchw, (0, 2, 3, 1))
    y = unet_down_forward_nhwc(x, weight, bias, gamma, beta, eps=eps,
                               batch_norm=batch_norm, out_dtype=out_dtype, **kw)
    return jnp.transpose(y, (0, 3, 1, 2))


# ------------------------------------ reference --------------------------------------

def _reference(x_nchw, weight, bias, gamma, beta, *, eps=1e-5, batch_norm=True):
    Cout = weight.shape[0]
    conv = jax.lax.conv_general_dilated(
        x_nchw, weight, window_strides=(2, 2), padding=((1, 1), (1, 1)),
        dimension_numbers=("NCHW", "OIHW", "NCHW")) + bias.reshape(1, Cout, 1, 1)
    if batch_norm:
        mean = conv.mean(axis=(0, 2, 3), keepdims=True)
        var = conv.var(axis=(0, 2, 3), keepdims=True)    # biased: BN training mode
        conv = (conv - mean) / jnp.sqrt(var + eps)
        conv = conv * gamma.reshape(1, Cout, 1, 1) + beta.reshape(1, Cout, 1, 1)
    return jnp.where(conv >= 0, conv, 0.2 * conv)


if __name__ == "__main__":
    def _run_case(name, N, Cin, H, Cout, batch_norm=True, **kw):
        key = jax.random.PRNGKey(0)
        kx, kwt, kb, kg, kbe = jax.random.split(key, 5)
        x = jax.random.normal(kx, (N, Cin, H, H), dtype=jnp.float32)
        weight = 0.05 * jax.random.normal(kwt, (Cout, Cin, 4, 4), dtype=jnp.float32)
        bias = 0.05 * jax.random.normal(kb, (Cout,), dtype=jnp.float32)
        gamma = 1.0 + 0.1 * jax.random.normal(kg, (Cout,), dtype=jnp.float32)
        beta = 0.1 * jax.random.normal(kbe, (Cout,), dtype=jnp.float32)

        out = jax.block_until_ready(
            unet_down_forward(x, weight, bias, gamma, beta, batch_norm=batch_norm, **kw))
        ref = _reference(x, weight, bias, gamma, beta, batch_norm=batch_norm)
        assert out.shape == (N, Cout, H // 2, H // 2), (name, out.shape)
        out32 = out.astype(jnp.float32)
        err = float(jnp.max(jnp.abs(out32 - ref)))
        assert jnp.allclose(out32, ref, rtol=2e-2, atol=2e-2), (name, err)

    # down2-style layer with BatchNorm (batch folded into one row tile)
    _run_case("bn", N=2, Cin=4, H=16, Cout=8)
    # down1-style layer (no BatchNorm; bias folded into the shift), f32 output (no alias)
    _run_case("no_bn", N=2, Cin=4, H=16, Cout=8, batch_norm=False, out_dtype=jnp.float32)
    # several row tiles per image: exercises the per-tile halo-row path
    _run_case("row_tiles", N=2, Cin=4, H=32, Cout=8, row_tile_rows=128)
    # K-axis grid tiling: exercises the f32 VMEM scratch accumulator path
    _run_case("k_tiles", N=1, Cin=64, H=16, Cout=8, k_tile_target=128)
    # tiny-spatial deep-layer shape (down7/down8 style): batch-folded row tile, th == 1
    _run_case("tiny_hw", N=2, Cin=8, H=2, Cout=16)
    # channel-split grid axis (second parallel axis when there is a single row tile)
    _run_case("chan_split", N=1, Cin=8, H=8, Cout=256)

    print("KERNEL_OK")
</pallas_src>

<mosaic_0001>
module attributes {stable_mosaic.version = 11 : i64} {
  func.func @kernel(%arg0: i32, %arg1: i32, %arg2: i32, %arg3: i32, %arg4: memref<2x8x9x16xbf16, #tpu.memory_space<vmem>>, %arg5: memref<2x1x9x16xbf16, #tpu.memory_space<vmem>>, %arg6: memref<2x2x16x128xbf16, #tpu.memory_space<vmem>>, %arg7: memref<128x128xbf16, #tpu.memory_space<vmem>>, %arg8: memref<1x2x128xf32, #tpu.memory_space<vmem>>) attributes {dimension_semantics = [#tpu.dimension_semantics<parallel>, #tpu.dimension_semantics<parallel>, #tpu.dimension_semantics<parallel>, #tpu.dimension_semantics<arbitrary>], iteration_bounds = array<i64: 1, 1, 1, 1>, scalar_prefetch = 0 : i64, scratch_operands = 0 : i64, tpu.core_type = #tpu.core_type<tc>, window_params = [{transform_indices = @transform_0, window_bounds = array<i64: 2, 8, 9, 16>}, {transform_indices = @transform_1, window_bounds = array<i64: 2, 1, 9, 16>}, {transform_indices = @transform_2, window_bounds = array<i64: 2, 2, 16, 128>}, {transform_indices = @transform_3, window_bounds = array<i64: 128, 128>}, {transform_indices = @transform_4, window_bounds = array<i64: 1, 2, 128>}]} {
    %c0 = arith.constant 0 : index
    %c0_0 = arith.constant 0 : index
    %c0_1 = arith.constant 0 : index
    %c0_2 = arith.constant 0 : index
    %0 = vector.load %arg4[%c0, %c0_0, %c0_1, %c0_2] : memref<2x8x9x16xbf16, #tpu.memory_space<vmem>>, vector<2x8x9x16xbf16>
    %c0_3 = arith.constant 0 : index
    %c0_4 = arith.constant 0 : index
    %c0_5 = arith.constant 0 : index
    %c0_6 = arith.constant 0 : index
    %1 = vector.load %arg5[%c0_3, %c0_4, %c0_5, %c0_6] : memref<2x1x9x16xbf16, #tpu.memory_space<vmem>>, vector<2x1x9x16xbf16>
    %2 = vector.extract_strided_slice %0 {offsets = [0, 1, 0, 0], sizes = [2, 7, 9, 16], strides = [1, 1, 1, 1]} : vector<2x8x9x16xbf16> to vector<2x7x9x16xbf16>
    %3 = tpu.concatenate %2, %1 in 1 : vector<2x7x9x16xbf16>, vector<2x1x9x16xbf16> -> vector<2x8x9x16xbf16>
    %4 = vector.extract_strided_slice %0 {offsets = [0, 0, 0, 0], sizes = [2, 8, 8, 16], strides = [1, 1, 1, 1]} : vector<2x8x9x16xbf16> to vector<2x8x8x16xbf16>
    %5 = vector.shape_cast %4 : vector<2x8x8x16xbf16> to vector<128x16xbf16>
    %c0_7 = arith.constant 0 : index
    %c0_8 = arith.constant 0 : index
    %c0_9 = arith.constant 0 : index
    %c0_10 = arith.constant 0 : index
    %6 = vector.load %arg6[%c0_7, %c0_8, %c0_9, %c0_10] : memref<2x2x16x128xbf16, #tpu.memory_space<vmem>>, vector<1x1x16x128xbf16>
    %7 = vector.shape_cast %6 : vector<1x1x16x128xbf16> to vector<16x128xbf16>
    %cst = arith.constant dense<0.000000e+00> : vector<128x128xf32>
    %8 = tpu.matmul %5, %7, %cst {dimension_numbers = #tpu.dot_dimension_numbers<[1], [0], [0], [1], [0, 0, 1, 1], [], []>} : vector<128x16xbf16>, vector<16x128xbf16>, vector<128x128xf32> -> vector<128x128xf32>
    %9 = vector.extract_strided_slice %0 {offsets = [0, 0, 1, 0], sizes = [2, 8, 8, 16], strides = [1, 1, 1, 1]} : vector<2x8x9x16xbf16> to vector<2x8x8x16xbf16>
    %10 = vector.shape_cast %9 : vector<2x8x8x16xbf16> to vector<128x16xbf16>
    %c0_11 = arith.constant 0 : index
    %c1 = arith.constant 1 : index
    %c0_12 = arith.constant 0 : index
    %c0_13 = arith.constant 0 : index
    %11 = vector.load %arg6[%c0_11, %c1, %c0_12, %c0_13] : memref<2x2x16x128xbf16, #tpu.memory_space<vmem>>, vector<1x1x16x128xbf16>
    %12 = vector.shape_cast %11 : vector<1x1x16x128xbf16> to vector<16x128xbf16>
    %cst_14 = arith.constant dense<0.000000e+00> : vector<128x128xf32>
    %13 = tpu.matmul %10, %12, %cst_14 {dimension_numbers = #tpu.dot_dimension_numbers<[1], [0], [0], [1], [0, 0, 1, 1], [], []>} : vector<128x16xbf16>, vector<16x128xbf16>, vector<128x128xf32> -> vector<128x128xf32>
    %14 = arith.addf %8, %13 : vector<128x128xf32>
    %15 = vector.extract_strided_slice %3 {offsets = [0, 0, 0, 0], sizes = [2, 8, 8, 16], strides = [1, 1, 1, 1]} : vector<2x8x9x16xbf16> to vector<2x8x8x16xbf16>
    %16 = vector.shape_cast %15 : vector<2x8x8x16xbf16> to vector<128x16xbf16>
    %c1_15 = arith.constant 1 : index
    %c0_16 = arith.constant 0 : index
    %c0_17 = arith.constant 0 : index
    %c0_18 = arith.constant 0 : index
    %17 = vector.load %arg6[%c1_15, %c0_16, %c0_17, %c0_18] : memref<2x2x16x128xbf16, #tpu.memory_space<vmem>>, vector<1x1x16x128xbf16>
    %18 = vector.shape_cast %17 : vector<1x1x16x128xbf16> to vector<16x128xbf16>
    %cst_19 = arith.constant dense<0.000000e+00> : vector<128x128xf32>
    %19 = tpu.matmul %16, %18, %cst_19 {dimension_numbers = #tpu.dot_dimension_numbers<[1], [0], [0], [1], [0, 0, 1, 1], [], []>} : vector<128x16xbf16>, vector<16x128xbf16>, vector<128x128xf32> -> vector<128x128xf32>
    %20 = arith.addf %14, %19 : vector<128x128xf32>
    %21 = vector.extract_strided_slice %3 {offsets = [0, 0, 1, 0], sizes = [2, 8, 8, 16], strides = [1, 1, 1, 1]} : vector<2x8x9x16xbf16> to vector<2x8x8x16xbf16>
    %22 = vector.shape_cast %21 : vector<2x8x8x16xbf16> to vector<128x16xbf16>
    %c1_20 = arith.constant 1 : index
    %c1_21 = arith.constant 1 : index
    %c0_22 = arith.constant 0 : index
    %c0_23 = arith.constant 0 : index
    %23 = vector.load %arg6[%c1_20, %c1_21, %c0_22, %c0_23] : memref<2x2x16x128xbf16, #tpu.memory_space<vmem>>, vector<1x1x16x128xbf16>
    %24 = vector.shape_cast %23 : vector<1x1x16x128xbf16> to vector<16x128xbf16>
    %cst_24 = arith.constant dense<0.000000e+00> : vector<128x128xf32>
    %25 = tpu.matmul %22, %24, %cst_24 {dimension_numbers = #tpu.dot_dimension_numbers<[1], [0], [0], [1], [0, 0, 1, 1], [], []>} : vector<128x16xbf16>, vector<16x128xbf16>, vector<128x128xf32> -> vector<128x128xf32>
    %26 = arith.addf %20, %25 : vector<128x128xf32>
    %cst_25 = arith.constant dense<0.000000e+00> : vector<128xf32>
    %27 = vector.multi_reduction <add>, %26, %cst_25 [0] : vector<128x128xf32> to vector<128xf32>
    %28 = vector.shape_cast %27 : vector<128xf32> to vector<1x128xf32>
    %cst_26 = arith.constant 7.812500e-03 : f32
    %29 = vector.broadcast %cst_26 : f32 to vector<1x128xf32>
    %30 = arith.mulf %28, %29 : vector<1x128xf32>
    %31 = vector.broadcast %30 : vector<1x128xf32> to vector<128x128xf32>
    %32 = arith.subf %26, %31 : vector<128x128xf32>
    %c0_27 = arith.constant 0 : index
    %c0_28 = arith.constant 0 : index
    %c0_29 = arith.constant 0 : index
    %33 = vector.load %arg8[%c0_27, %c0_28, %c0_29] : memref<1x2x128xf32, #tpu.memory_space<vmem>>, vector<1x1x128xf32>
    %34 = vector.shape_cast %33 : vector<1x1x128xf32> to vector<1x128xf32>
    %35 = vector.shape_cast %28 : vector<1x128xf32> to vector<1x1x128xf32>
    tpu.vector_store %arg8[%c0_27, %c0_28, %c0_29], %35 {strides = array<i32>} : memref<1x2x128xf32, #tpu.memory_space<vmem>>, vector<1x1x128xf32>,
    %36 = arith.mulf %32, %32 : vector<128x128xf32>
    %cst_30 = arith.constant dense<0.000000e+00> : vector<128xf32>
    %37 = vector.multi_reduction <add>, %36, %cst_30 [0] : vector<128x128xf32> to vector<128xf32>
    %38 = vector.shape_cast %37 : vector<128xf32> to vector<1x128xf32>
    %c0_31 = arith.constant 0 : index
    %c1_32 = arith.constant 1 : index
    %c0_33 = arith.constant 0 : index
    %39 = vector.load %arg8[%c0_31, %c1_32, %c0_33] : memref<1x2x128xf32, #tpu.memory_space<vmem>>, vector<1x1x128xf32>
    %40 = vector.shape_cast %39 : vector<1x1x128xf32> to vector<1x128xf32>
    %41 = vector.shape_cast %38 : vector<1x128xf32> to vector<1x1x128xf32>
    tpu.vector_store %arg8[%c0_31, %c1_32, %c0_33], %41 {strides = array<i32>} : memref<1x2x128xf32, #tpu.memory_space<vmem>>, vector<1x1x128xf32>,
    %42 = arith.truncf %26 : vector<128x128xf32> to vector<128x128xbf16>
    %c0_34 = arith.constant 0 : index
    %c0_35 = arith.constant 0 : index
    %43 = vector.load %arg7[%c0_34, %c0_35] : memref<128x128xbf16, #tpu.memory_space<vmem>>, vector<128x128xbf16>
    tpu.vector_store %arg7[%c0_34, %c0_35], %42 {strides = array<i32>} : memref<128x128xbf16, #tpu.memory_space<vmem>>, vector<128x128xbf16>,
    return
  }
  func.func @transform_0(%arg0: i32, %arg1: i32, %arg2: i32, %arg3: i32) -> (i32, i32, i32, i32) {
    %c0_i32 = arith.constant 0 : i32
    %c0_i32_0 = arith.constant 0 : i32
    return %arg0, %arg1, %c0_i32, %arg3 : i32, i32, i32, i32
  }
  func.func @transform_1(%arg0: i32, %arg1: i32, %arg2: i32, %arg3: i32) -> (i32, i32, i32, i32) {
    %c0_i32 = arith.constant 0 : i32
    %c0_i32_0 = arith.constant 0 : i32
    return %arg0, %arg1, %c0_i32, %arg3 : i32, i32, i32, i32
  }
  func.func @transform_2(%arg0: i32, %arg1: i32, %arg2: i32, %arg3: i32) -> (i32, i32, i32, i32) {
    %c0_i32 = arith.constant 0 : i32
    %c0_i32_0 = arith.constant 0 : i32
    %c0_i32_1 = arith.constant 0 : i32
    return %c0_i32, %c0_i32_0, %arg3, %arg2 : i32, i32, i32, i32
  }
  func.func @transform_3(%arg0: i32, %arg1: i32, %arg2: i32, %arg3: i32) -> (i32, i32) {
    %c1_i32 = arith.constant 1 : i32
    %0 = arith.muli %arg0, %c1_i32 : i32
    %1 = arith.addi %0, %arg1 : i32
    %c0_i32 = arith.constant 0 : i32
    return %1, %arg2 : i32, i32
  }
  func.func @transform_4(%arg0: i32, %arg1: i32, %arg2: i32, %arg3: i32) -> (i32, i32, i32) {
    %c1_i32 = arith.constant 1 : i32
    %0 = arith.muli %arg0, %c1_i32 : i32
    %1 = arith.addi %0, %arg1 : i32
    %c0_i32 = arith.constant 0 : i32
    %c0_i32_0 = arith.constant 0 : i32
    return %1, %c0_i32, %arg2 : i32, i32, i32
  }
}

</mosaic_0001>

<bundles_post_ra>
// kernel: tpu_custom_call.1
= control target key start
LH: loop header
LB: loop body
LE: loop exit
PB: predicated region body
PF: predicated region fallthrough
CT: control target
= control target key end

     0   :  { %10 = vsyncpa [#allocation4], 0  ;;  %s1534_s0 = inlined_call_operand.vmem [shape: bf16[2,9,9,16], index: 0, kind: input, shape index: {}]   ;;  %s1535_s1 = inlined_call_operand.vmem [shape: bf16[2,1,9,16], index: 1, kind: input, shape index: {}]   ;;  %s1536_s2 = inlined_call_operand.vmem [shape: bf16[2,2,16,128], index: 2, kind: input, shape index: {}]   ;;  %s1537_s3 = inlined_call_operand.hbm [shape: bf16[128,128], index: 3, kind: output, shape index: {0}]   ;;  %s1538_s4 = inlined_call_operand.hbm [shape: f32[1,2,128], index: 4, kind: output, shape index: {1}]  }
   0x1   :  { %v1136_v0 = vld [vmem:[%s1536_s2 + $0x10] sm:$0xff]  ;;  %v1134_v1 = vld [vmem:[%s1536_s2] sm:$0xff]  ;;  %v34_v2 = vld [vmem:[%s1534_s0 + $0x8] sm:$0xff]  }
   0x2   :  { %35 = vst [vmem:[#allocation2 + $0x8] sm:$0xff] %v34_v2   ;;  %v38_v3 = vld [vmem:[%s1534_s0 + $0x10] sm:$0xff]   ;;  %v30_v4 = vld [vmem:[%s1534_s0] sm:$0xff]   ;;  %v1135_v5 = vld [vmem:[%s1536_s2 + $0x8] sm:$0xff]  ;;  %732 = vmatpush.bf16.msra.mxu2 %v1136_v0  ;;  %638 = vmatpush.bf16.msra.mxu1 %v1134_v1 }
   0x3   :  { %39 = vst [vmem:[#allocation2 + $0x10] sm:$0xff] %v38_v3   ;;  %v1137_v6 = vld [vmem:[%s1536_s2 + $0x18] sm:$0xff]  ;;  %519 = vmatpush.bf16.msra.mxu0 %v1135_v5  ;;  %v46_v8 = vld [vmem:[%s1534_s0 + $0x20] sm:$0xff]   ;;  %v50_v9 = vld [vmem:[%s1534_s0 + $0x28] sm:$0xff]  }
   0x4   :  { %v42_v7 = vld [vmem:[%s1534_s0 + $0x18] sm:$0xff]   ;;  %31 = vst [vmem:[#allocation2] sm:$0xff] %v30_v4   ;;  %868 = vmatpush.bf16.msra.mxu3 %v1137_v6  ;;  %v54_v10 = vld [vmem:[%s1534_s0 + $0x30] sm:$0xff]  }
   0x5   :  { %43 = vst [vmem:[#allocation2 + $0x18] sm:$0xff] %v42_v7  }
   0x6   :  { %11 = vsyncpa [#allocation6], 0  ;;  %47 = vst [vmem:[#allocation2 + $0x20] sm:$0xff] %v46_v8   ;;  %vm487_vm0 = vcmask 130048   ;;  %vm227_vm1 = vsmask.f32 3328 }
   0x7   :  { %51 = vst [vmem:[#allocation2 + $0x28] sm:$0xff] %v50_v9   ;;  %vm228_vm2 = vsmask.f32 7440  ;;  %v58_v61 = vld [vmem:[%s1534_s0 + $0x38] sm:$0xff]   ;;  %s1045_s11 = sshll.u32 %s1537_s3, 4  ;;  %s1242_s12 = smov 64   ;;  %s1046_s11 = int_to_ptr.hbm [resolvable:$true] %s1045_s11 }
   0x8   :  { %55 = vst [vmem:[#allocation2 + $0x30] sm:$0xff] %v54_v10   ;;  %vm1315_vm3 = vmor %vm227_vm1, %vm228_vm2  ;;  %s1243_s13 = smov 4   ;;  %s1244_s3 = smov [#allocation5]  }
   0x9   :  { %v191_v11 = vld [vmem:[#allocation2 + $0x8] sm:$0xf]  ;;  %v192_v12 = vld [vmem:[#allocation2 + $0xc] sm:$0x1]  ;;  %59 = vst [vmem:[#allocation2 + $0x38] sm:$0xff] %v58_v61   ;;  %s1060_s14 = sshll.u32 %s1244_s3, 4  ;;  %s1061_s14 = int_to_ptr.vmem [resolvable:$true] %s1060_s14 }
   0xa   :  { %v1303_v13 = vld [vmem:[#allocation2 + $0x10] sm:$0xf]  ;;  %v245_v14 = vshrl.u32 %v191_v11, 16  ;;  %v248_v15 = vshll.u32 %v191_v11, 16  ;;  %v578_v16 = vunpack.c.l.b16 %v191_v11  ;;  %v254_v17 = vshll.u32 %v192_v12, 16  ;;  %s1062_s17 = sshll.u32 %s1538_s4, 4  ;;  %s1063_s17 = int_to_ptr.hbm [resolvable:$true] %s1062_s17 }
   0xb   :  { %v259_v18 = vshrl.u32 %v1303_v13, 16  ;;  %v262_v19 = vshll.u32 %v1303_v13, 16  ;;  %v579_v20 = vunpack.c.l.b16 %v1303_v13  ;;  %v189_v21 = vld [vmem:[#allocation2] sm:$0xf]  ;;  %v190_v22 = vld [vmem:[#allocation2 + $0x4] sm:$0x1] }
   0xc   :  { %v247_v23 = vrot.slane %v245_v14, 4  ;;  %v250_v24 = vrot.slane %v248_v15, 5  ;;  %v231_v25 = vshrl.u32 %v189_v21, 16  ;;  %v234_v26 = vshll.u32 %v189_v21, 16  ;;  %v194_v27 = vld [vmem:[#allocation2 + $0x14] sm:$0x1] }
   0xd   :  { %v261_v28 = vrot.slane %v259_v18, 4  ;;  %v264_v29 = vrot.slane %v262_v19, 5  ;;  %v687_v30 = vpack.c.b16 %v579_v20, %v578_v16  ;;  %v577_v31 = vunpack.c.l.b16 %v189_v21  ;;  %v195_v32 = vld [vmem:[#allocation2 + $0x18] sm:$0xf]  ;;  %v1310_v37 = vld [vmem:[#allocation2 + $0x20] sm:$0xf] }
   0xe   :  { %v233_v33 = vrot.slane %v231_v25, 4  ;;  %v236_v34 = vrot.slane %v234_v26, 5  ;;  %v240_v35 = vshll.u32 %v190_v22, 16  ;;  %v251_v36 = vor.u32 %v250_v24, %v247_v23  ;;  %v196_v55 = vld [vmem:[#allocation2 + $0x1c] sm:$0x1] }
   0xf   :  { %1112 = vmatmul.msk.bf16.vlgmr.msra.gmra.mxu2 %vm487_vm0, %v687_v30  ;;  %v593_v38 = vpack.c.b16 %v578_v16, %v577_v31  ;;  %v256_v40 = vrot.slane %v254_v17, 5  ;;  %v265_v41 = vor.u32 %v264_v29, %v261_v28  ;;  %v268_v42 = vshll.u32 %v194_v27, 16  ;;  %v198_v60 = vld [vmem:[#allocation2 + $0x24] sm:$0x1]  ;;  %v199_v15 = vld [vmem:[#allocation2 + $0x28] sm:$0xf] }
  0x10   :  { %v237_v43 = vor.u32 %v236_v34, %v233_v33  ;;  %v242_v44 = vrot.slane %v240_v35, 5  ;;  %v252_v45 = vrot.slane %v251_v36, 4  ;;  %v273_v46 = vshrl.u32 %v195_v32, 16  ;;  %v1334_v16 = vld [vmem:[#allocation2 + $0x30] sm:$0xf]  ;;  %v70_v33 = vld [vmem:[%s1534_s0 + $0x58] sm:$0xff]  }
  0x11   :  { %1098 = vmatmul.msk.bf16.vlgmr.msra.gmra.mxu1 %vm487_vm0, %v593_v38  ;;  %v266_v47 = vrot.slane %v265_v41, 4  ;;  %v270_v48 = vrot.slane %v268_v42, 5  ;;  %v276_v49 = vshll.u32 %v195_v32, 16  ;;  %v287_v50 = vshrl.u32 %v1310_v37, 16  ;;  %v200_v30 = vld [vmem:[#allocation2 + $0x2c] sm:$0x1] }
  0x12   :  { %v238_v51 = vrot.slane %v237_v43, 4  ;;  %v257_v52 = vsel %vm1315_vm3, %v252_v45, %v256_v40  ;;  %v275_v53 = vrot.slane %v273_v46, 4  ;;  %v290_v54 = vshll.u32 %v1310_v37, 16  ;;  %v202_v31 = vld [vmem:[#allocation2 + $0x34] sm:$0x1]  ;;  %v62_v34 = vld [vmem:[%s1534_s0 + $0x48] sm:$0xff]  }
  0x13   :  { %v458_v56 = vunpack.c.l.b16 %v257_v52  ;;  %v271_v57 = vsel %vm1315_vm3, %v266_v47, %v270_v48  ;;  %v278_v58 = vrot.slane %v276_v49, 5  ;;  %v289_v59 = vrot.slane %v287_v50, 4  ;;  %71 = vst [vmem:[#allocation2 + $0x50] sm:$0xff] %v70_v33   ;;  %v221_v49 = vld [vmem:[%s1535_s1] sm:$0xf] }
  0x14   :  { %v243_v62 = vsel %vm1315_vm3, %v238_v51, %v242_v44  ;;  %v459_v63 = vunpack.c.l.b16 %v271_v57  ;;  %v292_v0 = vrot.slane %v290_v54, 5  ;;  %v282_v3 = vshll.u32 %v196_v55, 16  ;;  %63 = vst [vmem:[#allocation2 + $0x40] sm:$0xff] %v62_v34   ;;  %v203_v44 = vld [vmem:[#allocation2 + $0x38] sm:$0xf] }
  0x15   :  { %v457_v1 = vunpack.c.l.b16 %v243_v62  ;;  %v279_v2 = vor.u32 %v278_v58, %v275_v53  ;;  %v296_v6 = vshll.u32 %v198_v60, 16  ;;  %v580_v8 = vunpack.c.l.b16 %v195_v32  ;;  %v66_v32 = vld [vmem:[%s1534_s0 + $0x50] sm:$0xff]  }
  0x16   :  { %v823_v4 = vpack.c.b16 %v459_v63, %v458_v56  ;;  %v293_v5 = vor.u32 %v292_v0, %v289_v59  ;;  %v581_v9 = vunpack.c.l.b16 %v1310_v37  ;;  %v284_v11 = vrot.slane %v282_v3, 5  ;;  %67 = vst [vmem:[#allocation2 + $0x48] sm:$0xff] %v66_v32   ;;  %v204_v0 = vld [vmem:[#allocation2 + $0x3c] sm:$0x1]  ;;  %v74_v3 = vld [vmem:[%s1534_s0 + $0x60] sm:$0xff]  }
  0x17   :  { %v473_v7 = vpack.c.b16 %v458_v56, %v457_v1  ;;  %v280_v10 = vrot.slane %v279_v2, 4  ;;  %v298_v14 = vrot.slane %v296_v6, 5  ;;  %v594_v18 = vpack.c.b16 %v580_v8, %v579_v20  ;;  %v222_v1 = vld [vmem:[%s1535_s1 + $0x4] sm:$0x1]  ;;  %75 = vst [vmem:[#allocation2 + $0x58] sm:$0xff] %v74_v3  }
  0x18   :  { %1126 = vmatmul.msk.bf16.vlgmr.msra.gmra.mxu3 %vm487_vm0, %v823_v4  ;;  %v294_v12 = vrot.slane %v293_v5, 4  ;;  %v688_v17 = vpack.c.b16 %v581_v9, %v580_v8  ;;  %v301_v19 = vshrl.u32 %v199_v15, 16  ;;  %v304_v21 = vshll.u32 %v199_v15, 16  ;;  %v78_v4 = vld [vmem:[%s1534_s0 + $0x68] sm:$0xff]  }
  0x19   :  { %1086 = vmatmul.msk.bf16.vlgmr.msra.gmra.mxu0 %vm487_vm0, %v473_v7  ;;  %v285_v22 = vsel %vm1315_vm3, %v280_v10, %v284_v11  ;;  %v315_v24 = vshrl.u32 %v1334_v16, 16  ;;  %v318_v25 = vshll.u32 %v1334_v16, 16  ;;  %v310_v38 = vshll.u32 %v200_v30, 16  ;;  %79 = vst [vmem:[#allocation2 + $0x60] sm:$0xff] %v78_v4  }
  0x1a   :  { %v299_v23 = vsel %vm1315_vm3, %v294_v12, %v298_v14  ;;  %v460_v26 = vunpack.c.l.b16 %v285_v22  ;;  %v303_v13 = vrot.slane %v301_v19, 4  ;;  %v306_v20 = vrot.slane %v304_v21, 5 }
  0x1b   :  { %v1345_v27 = vunpack.c.l.b16 %v299_v23  ;;  %v317_v28 = vrot.slane %v315_v24, 4  ;;  %v320_v29 = vrot.slane %v318_v25, 5  ;;  %v324_v41 = vshll.u32 %v202_v31, 16  ;;  %v205_v21 = vld [vmem:[#allocation2 + $0x40] sm:$0xf] }
  0x1c   :  { %v474_v35 = vpack.c.b16 %v460_v26, %v459_v63  ;;  %v307_v37 = vor.u32 %v306_v20, %v303_v13  ;;  %v582_v42 = vunpack.c.l.b16 %v199_v15  ;;  %v583_v43 = vunpack.c.l.b16 %v1334_v16 }
  0x1d   :  { %v824_v36 = vpack.c.b16 %v1345_v27, %v460_v26  ;;  %v321_v40 = vor.u32 %v320_v29, %v317_v28  ;;  %v312_v46 = vrot.slane %v310_v38, 5  ;;  %v326_v48 = vrot.slane %v324_v41, 5  ;;  %v210_v38 = vld [vmem:[#allocation2 + $0x54] sm:$0x1] }
  0x1e   :  { %v308_v45 = vrot.slane %v307_v37, 4  ;;  %v689_v50 = vpack.c.b16 %v583_v43, %v582_v42  ;;  %v329_v51 = vshrl.u32 %v203_v44, 16  ;;  %v332_v52 = vshll.u32 %v203_v44, 16  ;;  %v208_v37 = vld [vmem:[#allocation2 + $0x4c] sm:$0x1]  ;;  %v82_v41 = vld [vmem:[%s1534_s0 + $0x70] sm:$0xff]  }
  0x1f   :  { %1113 = vmatmul.msk.bf16.gmra.mxu2 %vm487_vm0, %v688_v17  ;;  %v322_v47 = vrot.slane %v321_v40, 4  ;;  %v791_v53 = vshrl.u32 %v221_v49, 16  ;;  %v794_v54 = vshll.u32 %v221_v49, 16  ;;  %v595_v55 = vpack.c.b16 %v582_v42, %v581_v9  ;;  %v207_v17 = vld [vmem:[#allocation2 + $0x48] sm:$0xf]  ;;  %v86_v42 = vld [vmem:[%s1534_s0 + $0x78] sm:$0xff]  }
  0x20   :  { %v313_v56 = vsel %vm1315_vm3, %v308_v45, %v312_v46  ;;  %v331_v58 = vrot.slane %v329_v51, 4  ;;  %v334_v59 = vrot.slane %v332_v52, 5  ;;  %v338_v6 = vshll.u32 %v204_v0, 16  ;;  %v206_v40 = vld [vmem:[#allocation2 + $0x44] sm:$0x1]  ;;  %83 = vst [vmem:[#allocation2 + $0x68] sm:$0xff] %v82_v41  }
  0x21   :  { %1099 = vmatmul.msk.bf16.gmra.mxu1 %vm487_vm0, %v594_v18  ;;  %v327_v57 = vsel %vm1315_vm3, %v322_v47, %v326_v48  ;;  %v462_v60 = vunpack.c.l.b16 %v313_v56  ;;  %v793_v62 = vrot.slane %v791_v53, 4  ;;  %v796_v63 = vrot.slane %v794_v54, 5  ;;  %v1385_v18 = vld [vmem:[#allocation2 + $0x50] sm:$0xf]  ;;  %87 = vst [vmem:[#allocation2 + $0x70] sm:$0xff] %v86_v42  }
  0x22   :  { %v1369_v61 = vunpack.c.l.b16 %v327_v57  ;;  %v335_v2 = vor.u32 %v334_v59, %v331_v58  ;;  %v800_v8 = vshll.u32 %v222_v1, 16  ;;  %v584_v10 = vunpack.c.l.b16 %v203_v44  ;;  %v211_v54 = vld [vmem:[#allocation2 + $0x58] sm:$0xf] }
  0x23   :  { %v797_v7 = vor.u32 %v796_v63, %v793_v62  ;;  %v475_v9 = vpack.c.b16 %v462_v60, %v1345_v27  ;;  %v685_v11 = vunpack.c.l.b16 %v221_v49  ;;  %v340_v14 = vrot.slane %v338_v6, 5 }
  0x24   :  { %v825_v5 = vpack.c.b16 %v1369_v61, %v462_v60  ;;  %v336_v12 = vrot.slane %v335_v2, 4  ;;  %v802_v16 = vrot.slane %v800_v8, 5  ;;  %v596_v22 = vpack.c.b16 %v584_v10, %v583_v43 }
  0x25   :  { %v798_v15 = vrot.slane %v797_v7, 4  ;;  %v690_v19 = vpack.c.b16 %v685_v11, %v584_v10  ;;  %v357_v25 = vshrl.u32 %v207_v17, 16  ;;  %v360_v26 = vshll.u32 %v207_v17, 16 }
  0x26   :  { %v341_v23 = vsel %vm1315_vm3, %v336_v12, %v340_v14  ;;  %v371_v27 = vshrl.u32 %v1385_v18, 16  ;;  %v374_v13 = vshll.u32 %v1385_v18, 16  ;;  %v343_v20 = vshrl.u32 %v205_v21, 16  ;;  %v212_v14 = vld [vmem:[#allocation2 + $0x5c] sm:$0x1] }
  0x27   :  { %v803_v24 = vsel %vm1315_vm3, %v798_v15, %v802_v16  ;;  %v346_v28 = vshll.u32 %v205_v21, 16  ;;  %v464_v29 = vunpack.c.l.b16 %v341_v23  ;;  %v359_v31 = vrot.slane %v357_v25, 4  ;;  %v214_v15 = vld [vmem:[#allocation2 + $0x64] sm:$0x1] }
  0x28   :  { %1127 = vmatmul.msk.bf16.gmra.mxu3 %vm487_vm0, %v824_v36  ;;  %v821_v30 = vunpack.c.l.b16 %v803_v24  ;;  %v362_v32 = vrot.slane %v360_v26, 5  ;;  %v373_v33 = vrot.slane %v371_v27, 4  ;;  %v376_v34 = vrot.slane %v374_v13, 5 }
  0x29   :  { %1087 = vmatmul.msk.bf16.gmra.mxu0 %vm487_vm0, %v474_v35  ;;  %v345_v35 = vrot.slane %v343_v20, 4  ;;  %v348_v36 = vrot.slane %v346_v28, 5  ;;  %v476_v43 = vpack.c.b16 %v464_v29, %v1369_v61  ;;  %v366_v46 = vshll.u32 %v208_v37, 16 }
  0x2a   :  { %v826_v44 = vpack.c.b16 %v821_v30, %v464_v29  ;;  %v363_v45 = vor.u32 %v362_v32, %v359_v31  ;;  %v377_v47 = vor.u32 %v376_v34, %v373_v33  ;;  %v380_v48 = vshll.u32 %v210_v38, 16  ;;  %v215_v29 = vld [vmem:[#allocation2 + $0x68] sm:$0xf]  ;;  %v1423_v30 = vld [vmem:[#allocation2 + $0x70] sm:$0xf] }
  0x2b   :  { %v586_v49 = vunpack.c.l.b16 %v207_v17  ;;  %v349_v51 = vor.u32 %v348_v36, %v345_v35  ;;  %v352_v52 = vshll.u32 %v206_v40, 16  ;;  %v585_v53 = vunpack.c.l.b16 %v205_v21 }
  0x2c   :  { %v364_v56 = vrot.slane %v363_v45, 4  ;;  %v368_v57 = vrot.slane %v366_v46, 5  ;;  %v378_v58 = vrot.slane %v377_v47, 4  ;;  %v382_v59 = vrot.slane %v380_v48, 5  ;;  %v216_v46 = vld [vmem:[#allocation2 + $0x6c] sm:$0x1] }
  0x2d   :  { %v350_v61 = vrot.slane %v349_v51, 4  ;;  %v354_v62 = vrot.slane %v352_v52, 5  ;;  %v385_v63 = vshrl.u32 %v211_v54, 16  ;;  %v388_v0 = vshll.u32 %v211_v54, 16  ;;  %v218_v47 = vld [vmem:[#allocation2 + $0x74] sm:$0x1] }
  0x2e   :  { %v597_v3 = vpack.c.b16 %v586_v49, %v585_v53  ;;  %v369_v4 = vsel %vm1315_vm3, %v364_v56, %v368_v57  ;;  %v408_v21 = vshll.u32 %v214_v15, 16  ;;  %v588_v25 = vunpack.c.l.b16 %v211_v54 }
  0x2f   :  { %1114 = vmatmul.msk.bf16.gmra.mxu2 %vm487_vm0, %v689_v50  ;;  %v587_v50 = vunpack.c.l.b16 %v1385_v18  ;;  %v355_v6 = vsel %vm1315_vm3, %v350_v61, %v354_v62  ;;  %v387_v7 = vrot.slane %v385_v63, 4  ;;  %v390_v8 = vrot.slane %v388_v0, 5  ;;  %v223_v61 = vld [vmem:[%s1535_s1 + $0x8] sm:$0xf] }
  0x30   :  { %v466_v11 = vunpack.c.l.b16 %v369_v4  ;;  %v465_v16 = vunpack.c.l.b16 %v355_v6  ;;  %v394_v18 = vshll.u32 %v212_v14, 16  ;;  %v410_v28 = vrot.slane %v408_v21, 5  ;;  %v224_v14 = vld [vmem:[%s1535_s1 + $0xc] sm:$0x1]  ;;  %s1241_s1 = smov [#allocation3]  }
  0x31   :  { %1100 = vmatmul.msk.bf16.gmra.mxu1 %vm487_vm0, %v595_v55  ;;  %v1404_v55 = vld [vmem:[#allocation2 + $0x60] sm:$0xf]  ;;  %v691_v60 = vpack.c.b16 %v587_v50, %v586_v49  ;;  %v391_v17 = vor.u32 %v390_v8, %v387_v7  ;;  %v413_v34 = vshrl.u32 %v215_v29, 16  ;;  %v416_v35 = vshll.u32 %v215_v29, 16  ;;  %s1043_s9 = sshll.u32 %s1241_s1, 4  ;;  %s1044_s9 = int_to_ptr.vmem [resolvable:$true] %s1043_s9 }
  0x32   :  { %v399_v1 = vshrl.u32 %v1404_v55, 16  ;;  %v402_v2 = vshll.u32 %v1404_v55, 16  ;;  %v477_v24 = vpack.c.b16 %v466_v11, %v465_v16  ;;  %v589_v26 = vunpack.c.l.b16 %v1404_v55 }
  0x33   :  { %v392_v27 = vrot.slane %v391_v17, 4  ;;  %v396_v13 = vrot.slane %v394_v18, 5  ;;  %v427_v36 = vshrl.u32 %v1423_v30, 16  ;;  %v430_v37 = vshll.u32 %v1423_v30, 16 }
  0x34   :  { %v404_v10 = vrot.slane %v402_v2, 5  ;;  %v692_v31 = vpack.c.b16 %v589_v26, %v588_v25  ;;  %v598_v38 = vpack.c.b16 %v588_v25, %v587_v50  ;;  %v415_v42 = vrot.slane %v413_v34, 4 }
  0x35   :  { %v397_v32 = vsel %vm1315_vm3, %v392_v27, %v396_v13  ;;  %v432_v45 = vrot.slane %v430_v37, 5  ;;  %v422_v51 = vshll.u32 %v216_v46, 16  ;;  %v436_v53 = vshll.u32 %v218_v47, 16 }
  0x36   :  { %v468_v40 = vunpack.c.l.b16 %v397_v32  ;;  %v590_v55 = vunpack.c.l.b16 %v215_v29  ;;  %v591_v50 = vunpack.c.l.b16 %v1423_v30  ;;  %v805_v4 = vshrl.u32 %v223_v61, 16 }
  0x37   :  { %v424_v57 = vrot.slane %v422_v51, 5  ;;  %v814_v21 = vshll.u32 %v224_v14, 16 }
  0x38   :  { %1128 = vmatmul.msk.bf16.gmra.mxu3 %vm487_vm0, %v825_v5  ;;  %v383_v5 = vsel %vm1315_vm3, %v378_v58, %v382_v59  ;;  %v438_v59 = vrot.slane %v436_v53, 5  ;;  %v693_v62 = vpack.c.b16 %v591_v50, %v590_v55  ;;  %v599_v63 = vpack.c.b16 %v590_v55, %v589_v26 }
  0x39   :  { %1088 = vmatmul.msk.bf16.gmra.mxu0 %vm487_vm0, %v475_v9  ;;  %v401_v9 = vrot.slane %v399_v1, 4  ;;  %v467_v12 = vunpack.c.l.b16 %v383_v5  ;;  %v808_v5 = vshll.u32 %v223_v61, 16  ;;  %v816_v27 = vrot.slane %v814_v21, 5 }
  0x3b   :  { %v827_v23 = vpack.c.b16 %v467_v12, %v466_v11  ;;  %v478_v54 = vpack.c.b16 %v468_v40, %v467_v12  ;;  %v810_v11 = vrot.slane %v808_v5, 5 }
  0x3f   :  { %1115 = vmatmul.msk.bf16.gmra.mxu2 %vm487_vm0, %v690_v19  ;;  %v405_v19 = vor.u32 %v404_v10, %v401_v9  ;;  %v807_v10 = vrot.slane %v805_v4, 4 }
  0x41   :  { %1101 = vmatmul.msk.bf16.gmra.mxu1 %vm487_vm0, %v596_v22  ;;  %v90_v22 = vld [vmem:[%s1534_s0 + $0x80] sm:$0xff]   ;;  %v406_v20 = vrot.slane %v405_v19, 4  ;;  %v811_v19 = vor.u32 %v810_v11, %v807_v10 }
  0x42   :  { %91 = vst [vmem:[#allocation2 + $0x78] sm:$0xff] %v90_v22  }
  0x43   :  { %v411_v33 = vsel %vm1315_vm3, %v406_v20, %v410_v28  ;;  %v812_v26 = vrot.slane %v811_v19, 4 }
  0x44   :  { %v469_v41 = vunpack.c.l.b16 %v411_v33 }
  0x45   :  { %v817_v29 = vsel %vm1315_vm3, %v812_v26, %v816_v27 }
  0x46   :  { %v828_v48 = vpack.c.b16 %v469_v41, %v468_v40 }
  0x48   :  { %1129 = vmatmul.msk.bf16.gmra.mxu3 %vm487_vm0, %v826_v44  ;;  %v429_v44 = vrot.slane %v427_v36, 4 }
  0x49   :  { %1089 = vmatmul.msk.bf16.gmra.mxu0 %vm487_vm0, %v476_v43  ;;  %v418_v43 = vrot.slane %v416_v35, 5  ;;  %v220_v12 = vld [vmem:[#allocation2 + $0x7c] sm:$0x1] }
  0x4a   :  { %v433_v52 = vor.u32 %v432_v45, %v429_v44  ;;  %v450_v18 = vshll.u32 %v220_v12, 16 }
  0x4b   :  { %v419_v49 = vor.u32 %v418_v43, %v415_v42 }
  0x4c   :  { %v434_v58 = vrot.slane %v433_v52, 4  ;;  %v452_v25 = vrot.slane %v450_v18, 5 }
  0x4d   :  { %v420_v56 = vrot.slane %v419_v49, 4 }
  0x4e   :  { %v439_v1 = vsel %vm1315_vm3, %v434_v58, %v438_v59 }
  0x4f   :  { %1116 = vmatmul.msk.bf16.gmra.mxu2 %vm487_vm0, %v691_v60  ;;  %v219_v60 = vld [vmem:[#allocation2 + $0x78] sm:$0xf]  ;;  %v425_v0 = vsel %vm1315_vm3, %v420_v56, %v424_v57  ;;  %v471_v7 = vunpack.c.l.b16 %v439_v1 }
  0x50   :  { %v441_v2 = vshrl.u32 %v219_v60, 16  ;;  %v470_v6 = vunpack.c.l.b16 %v425_v0  ;;  %v592_v22 = vunpack.c.l.b16 %v219_v60 }
  0x51   :  { %1102 = vmatmul.msk.bf16.gmra.mxu1 %vm487_vm0, %v597_v3  ;;  %v444_v3 = vshll.u32 %v219_v60, 16 }
  0x52   :  { %v443_v8 = vrot.slane %v441_v2, 4  ;;  %v479_v15 = vpack.c.b16 %v470_v6, %v469_v41  ;;  %v829_v16 = vpack.c.b16 %v471_v7, %v470_v6  ;;  %v600_v20 = vpack.c.b16 %v592_v22, %v591_v50 }
  0x53   :  { %v446_v9 = vrot.slane %v444_v3, 5 }
  0x55   :  { %v447_v17 = vor.u32 %v446_v9, %v443_v8 }
  0x58   :  { %1130 = vmatmul.msk.bf16.gmra.mxu3 %vm487_vm0, %v827_v23  ;;  %v686_v23 = vunpack.c.l.b16 %v223_v61 }
  0x59   :  { %1090 = vmatmul.msk.bf16.gmra.mxu0 %vm487_vm0, %v477_v24  ;;  %v448_v24 = vrot.slane %v447_v17, 4 }
  0x5a   :  { %v694_v13 = vpack.c.b16 %v686_v23, %v592_v22 }
  0x5b   :  { %v453_v28 = vsel %vm1315_vm3, %v448_v24, %v452_v25 }
  0x5c   :  { %v472_v30 = vunpack.c.l.b16 %v453_v28 }
  0x5e   :  { %v480_v33 = vpack.c.b16 %v472_v30, %v471_v7 }
  0x5f   :  { %1117 = vmatmul.msk.bf16.gmra.mxu2 %vm487_vm0, %v692_v31  ;;  %v822_v31 = vunpack.c.l.b16 %v817_v29 }
  0x61   :  { %1103 = vmatmul.msk.bf16.gmra.mxu1 %vm487_vm0, %v598_v38  ;;  %v830_v32 = vpack.c.b16 %v822_v31, %v472_v30 }
  0x68   :  { %1131 = vmatmul.msk.bf16.gmra.mxu3 %vm487_vm0, %v828_v48 }
  0x69   :  { %1091 = vmatmul.msk.bf16.gmra.mxu0 %vm487_vm0, %v478_v54 }
  0x6f   :  { %1118 = vmatmul.msk.bf16.gmra.mxu2 %vm487_vm0, %v693_v62 }
  0x71   :  { %1104 = vmatmul.msk.bf16.gmra.mxu1 %vm487_vm0, %v599_v63 }
  0x78   :  { %1132 = vmatmul.msk.bf16.gmra.mxu3 %vm487_vm0, %v829_v16 }
  0x79   :  { %1092 = vmatmul.msk.bf16.gmra.mxu0 %vm487_vm0, %v479_v15 }
  0x7f   :  { %1119 = vmatmul.msk.bf16.gmra.mxu2 %vm487_vm0, %v694_v13 }
  0x81   :  { %1105 = vmatmul.msk.bf16.gmra.mxu1 %vm487_vm0, %v600_v20 }
  0x88   :  { %1133 = vmatmul.msk.bf16.gmra.mxu3 %vm487_vm0, %v830_v32 }
  0x89   :  { %1093 = vmatmul.msk.bf16.gmra.mxu0 %vm487_vm0, %v480_v33 }
  0x8e   :  { %v640_v34 = vpop.f32.mrf.mxu1 }
  0x92   :  { %v734_v35 = vpop.f32.mrf.mxu2 }
  0x96   :  { %v521_v36 = vpop.f32.mrf.mxu0  ;;  %v642_v37 = vpop.f32.mrf.mxu1 }
  0x97   :  { %v641_v39 = vadd.f32 %v640_v34, %v521_v36 }
  0x99   :  { %v774_v44 = vadd.f32 %v734_v35, %v641_v39 }
  0x9a   :  { %v736_v38 = vpop.f32.mrf.mxu2 }
  0x9b   :  { %v870_v40 = vpop.f32.mrf.mxu3 }
  0x9c   :  { %v1458_v48 = vadd.f32 %v870_v40, %v774_v44 }
  0x9e   :  { %v523_v41 = vpop.f32.mrf.mxu0  ;;  %v645_v42 = vpop.f32.mrf.mxu1 }
  0x9f   :  { %v643_v43 = vadd.f32 %v642_v37, %v523_v41 }
  0xa1   :  { %v775_v46 = vadd.f32 %v736_v38, %v643_v43 }
  0xa2   :  { %v739_v45 = vpop.f32.mrf.mxu2 }
  0xa3   :  { %v872_v47 = vpop.f32.mrf.mxu3 }
  0xa4   :  { %v1460_v49 = vadd.f32 %v872_v47, %v775_v46 }
  0xa6   :  { %v1141_v51 = vpack.c.bf16 %v1460_v49, %v1458_v48  ;;  %v526_v52 = vpop.f32.mrf.mxu0  ;;  %v647_v53 = vpop.f32.mrf.mxu1 }
  0xa7   :  { %v646_v50 = vadd.f32 %v645_v42, %v526_v52 }
  0xa8   :  { %1142 = vst [vmem:[#allocation3] sm:$0xff] %v1141_v51  }
  0xa9   :  { %v776_v59 = vadd.f32 %v739_v45, %v646_v50 }
  0xaa   :  { %v741_v54 = vpop.f32.mrf.mxu2 }
  0xab   :  { %v875_v55 = vpop.f32.mrf.mxu3 }
  0xac   :  { %v1464_v63 = vadd.f32 %v875_v55, %v776_v59 }
  0xae   :  { %v528_v56 = vpop.f32.mrf.mxu0  ;;  %v650_v57 = vpop.f32.mrf.mxu1 }
  0xaf   :  { %v648_v58 = vadd.f32 %v647_v53, %v528_v56 }
  0xb1   :  { %v777_v61 = vadd.f32 %v741_v54, %v648_v58 }
  0xb2   :  { %v744_v60 = vpop.f32.mrf.mxu2 }
  0xb3   :  { %v877_v62 = vpop.f32.mrf.mxu3 }
  0xb4   :  { %v1466_v0 = vadd.f32 %v877_v62, %v777_v61 }
  0xb6   :  { %v1146_v1 = vpack.c.bf16 %v1466_v0, %v1464_v63  ;;  %v531_v2 = vpop.f32.mrf.mxu0  ;;  %v652_v3 = vpop.f32.mrf.mxu1 }
  0xb7   :  { %v651_v6 = vadd.f32 %v650_v57, %v531_v2 }
  0xb8   :  { %1178 = vst [vmem:[#allocation3 + $0x8] sm:$0xff] %v1146_v1  }
  0xb9   :  { %v778_v10 = vadd.f32 %v744_v60, %v651_v6 }
  0xba   :  { %v746_v4 = vpop.f32.mrf.mxu2 }
  0xbb   :  { %v880_v5 = vpop.f32.mrf.mxu3 }
  0xbc   :  { %v1470_v15 = vadd.f32 %v880_v5, %v778_v10 }
  0xbe   :  { %v533_v7 = vpop.f32.mrf.mxu0  ;;  %v655_v8 = vpop.f32.mrf.mxu1 }
  0xbf   :  { %v653_v9 = vadd.f32 %v652_v3, %v533_v7  ;;  %v926_v3 = vadd.f32 %v1460_v49, %v1458_v48 }
  0xc1   :  { %v779_v12 = vadd.f32 %v746_v4, %v653_v9  ;;  %v927_v6 = vadd.f32 %v926_v3, %v1464_v63 }
  0xc2   :  { %v749_v11 = vpop.f32.mrf.mxu2 }
  0xc3   :  { %v882_v14 = vpop.f32.mrf.mxu3  ;;  %v928_v9 = vadd.f32 %v927_v6, %v1466_v0 }
  0xc4   :  { %v1472_v16 = vadd.f32 %v882_v14, %v779_v12 }
  0xc5   :  { %v929_v12 = vadd.f32 %v928_v9, %v1470_v15 }
  0xc6   :  { %v1151_v17 = vpack.c.bf16 %v1472_v16, %v1470_v15  ;;  %v536_v18 = vpop.f32.mrf.mxu0  ;;  %v657_v19 = vpop.f32.mrf.mxu1 }
  0xc7   :  { %v656_v23 = vadd.f32 %v655_v8, %v536_v18 }
  0xc8   :  { %1179 = vst [vmem:[#allocation3 + $0x10] sm:$0xff] %v1151_v17   ;;  %v930_v17 = vadd.f32 %v929_v12, %v1472_v16 }
  0xc9   :  { %v780_v27 = vadd.f32 %v749_v11, %v656_v23 }
  0xca   :  { %v751_v21 = vpop.f32.mrf.mxu2 }
  0xcb   :  { %v885_v22 = vpop.f32.mrf.mxu3 }
  0xcc   :  { %v1476_v29 = vadd.f32 %v885_v22, %v780_v27 }
  0xce   :  { %v538_v24 = vpop.f32.mrf.mxu0  ;;  %v660_v25 = vpop.f32.mrf.mxu1 }
  0xcf   :  { %v658_v26 = vadd.f32 %v657_v19, %v538_v24 }
  0xd1   :  { %v781_v20 = vadd.f32 %v751_v21, %v658_v26  ;;  %v931_v21 = vadd.f32 %v930_v17, %v1476_v29 }
  0xd2   :  { %v754_v13 = vpop.f32.mrf.mxu2 }
  0xd3   :  { %v887_v28 = vpop.f32.mrf.mxu3 }
  0xd4   :  { %v1478_v30 = vadd.f32 %v887_v28, %v781_v20 }
  0xd6   :  { %v1156_v31 = vpack.c.bf16 %v1478_v30, %v1476_v29  ;;  %v541_v32 = vpop.f32.mrf.mxu0  ;;  %v662_v33 = vpop.f32.mrf.mxu1 }
  0xd7   :  { %v661_v36 = vadd.f32 %v660_v25, %v541_v32  ;;  %v932_v25 = vadd.f32 %v931_v21, %v1478_v30 }
  0xd8   :  { %1180 = vst [vmem:[#allocation3 + $0x18] sm:$0xff] %v1156_v31  }
  0xd9   :  { %v782_v39 = vadd.f32 %v754_v13, %v661_v36 }
  0xda   :  { %v756_v34 = vpop.f32.mrf.mxu2 }
  0xdb   :  { %v890_v35 = vpop.f32.mrf.mxu3 }
  0xdc   :  { %v1482_v44 = vadd.f32 %v890_v35, %v782_v39 }
  0xde   :  { %v543_v37 = vpop.f32.mrf.mxu0  ;;  %v665_v38 = vpop.f32.mrf.mxu1  ;;  %v933_v20 = vadd.f32 %v932_v25, %v1482_v44 }
  0xdf   :  { %v663_v40 = vadd.f32 %v662_v33, %v543_v37 }
  0xe1   :  { %v783_v42 = vadd.f32 %v756_v34, %v663_v40 }
  0xe2   :  { %v759_v41 = vpop.f32.mrf.mxu2 }
  0xe3   :  { %v892_v43 = vpop.f32.mrf.mxu3 }
  0xe4   :  { %v1484_v45 = vadd.f32 %v892_v43, %v783_v42 }
  0xe6   :  { %v1161_v46 = vpack.c.bf16 %v1484_v45, %v1482_v44  ;;  %v546_v47 = vpop.f32.mrf.mxu0  ;;  %v667_v51 = vpop.f32.mrf.mxu1  ;;  %v934_v31 = vadd.f32 %v933_v20, %v1484_v45 }
  0xe7   :  { %v666_v54 = vadd.f32 %v665_v38, %v546_v47 }
  0xe8   :  { %1181 = vst [vmem:[#allocation3 + $0x20] sm:$0xff] %v1161_v46  }
  0xe9   :  { %v784_v56 = vadd.f32 %v759_v41, %v666_v54 }
  0xea   :  { %v761_v52 = vpop.f32.mrf.mxu2 }
  0xeb   :  { %v895_v53 = vpop.f32.mrf.mxu3 }
  0xec   :  { %v1488_v61 = vadd.f32 %v895_v53, %v784_v56 }
  0xee   :  { %v548_v55 = vpop.f32.mrf.mxu0  ;;  %v670_v57 = vpop.f32.mrf.mxu1  ;;  %v935_v33 = vadd.f32 %v934_v31, %v1488_v61 }
  0xef   :  { %v668_v50 = vadd.f32 %v667_v51, %v548_v55 }
  0xf1   :  { %v785_v58 = vadd.f32 %v761_v52, %v668_v50 }
  0xf2   :  { %v764_v59 = vpop.f32.mrf.mxu2 }
  0xf3   :  { %v897_v60 = vpop.f32.mrf.mxu3 }
  0xf4   :  { %v1490_v62 = vadd.f32 %v897_v60, %v785_v58 }
  0xf6   :  { %v1166_v1 = vpack.c.bf16 %v1490_v62, %v1488_v61  ;;  %v551_v2 = vpop.f32.mrf.mxu0  ;;  %v672_v4 = vpop.f32.mrf.mxu1  ;;  %v936_v35 = vadd.f32 %v935_v33, %v1490_v62 }
  0xf7   :  { %v671_v7 = vadd.f32 %v670_v57, %v551_v2 }
  0xf8   :  { %1182 = vst [vmem:[#allocation3 + $0x28] sm:$0xff] %v1166_v1  }
  0xf9   :  { %v786_v14 = vadd.f32 %v764_v59, %v671_v7 }
  0xfa   :  { %v766_v8 = vpop.f32.mrf.mxu2 }
  0xfb   :  { %v900_v5 = vpop.f32.mrf.mxu3 }
  0xfc   :  { %v1501_v22 = vadd.f32 %v900_v5, %v786_v14 }
  0xfe   :  { %v553_v10 = vpop.f32.mrf.mxu0  ;;  %v675_v23 = vpop.f32.mrf.mxu1  ;;  %v937_v40 = vadd.f32 %v936_v35, %v1501_v22 }
  0xff   :  { %v673_v11 = vadd.f32 %v672_v4, %v553_v10 }
 0x101   :  { %v787_v18 = vadd.f32 %v766_v8, %v673_v11 }
 0x102   :  { %v769_v13 = vpop.f32.mrf.mxu2 }
 0x103   :  { %v902_v19 = vpop.f32.mrf.mxu3 }
 0x104   :  { %v1503_v24 = vadd.f32 %v902_v19, %v787_v18 }
 0x106   :  { %v1171_v26 = vpack.c.bf16 %v1503_v24, %v1501_v22  ;;  %v556_v27 = vpop.f32.mrf.mxu0  ;;  %v677_v36 = vpop.f32.mrf.mxu1  ;;  %v938_v42 = vadd.f32 %v937_v40, %v1503_v24 }
 0x107   :  { %v676_v28 = vadd.f32 %v675_v23, %v556_v27 }
 0x108   :  { %1183 = vst [vmem:[#allocation3 + $0x30] sm:$0xff] %v1171_v26  }
 0x109   :  { %v788_v34 = vadd.f32 %v769_v13, %v676_v28 }
 0x10a   :  { %v771_v41 = vpop.f32.mrf.mxu2 }
 0x10b   :  { %v905_v32 = vpop.f32.mrf.mxu3 }
 0x10c   :  { %v924_v39 = vadd.f32 %v905_v32, %v788_v34 }
 0x10e   :  { %v558_v37 = vpop.f32.mrf.mxu0  ;;  %v939_v47 = vadd.f32 %v938_v42, %v924_v39 }
 0x10f   :  { %v678_v38 = vadd.f32 %v677_v36, %v558_v37 }
 0x111   :  { %v789_v43 = vadd.f32 %v771_v41, %v678_v38 }
 0x113   :  { %v907_v46 = vpop.f32.mrf.mxu3 }
 0x114   :  { %v925_v51 = vadd.f32 %v907_v46, %v789_v43 }
 0x116   :  { %v940_v52 = vadd.f32 %v939_v47, %v925_v51  ;;  %v1176_v53 = vpack.c.bf16 %v925_v51, %v924_v39 }
 0x118   :  { %v941_v54 = vrot.slane %v940_v52, 4  ;;  %1184 = vst [vmem:[#allocation3 + $0x38] sm:$0xff] %v1176_v53  }
 0x119   :  { %1051 = dma.vmem_to_hbm [thread:$0]  %s1044_s9, 1024, %s1046_s11, [#allocation4], %s1242_s12, %s1242_s12, %s1243_s13  }
 0x11a   :  { %v942_v55 = vadd.f32 %v941_v54, %v940_v52 }
 0x11c   :  { %v943_v50 = vrot.slane %v942_v55, 2 }
 0x11e   :  { %v944_v56 = vadd.f32 %v943_v50, %v942_v55 }
 0x120   :  { %v945_v57 = vrot.slane %v944_v56, 1 }
 0x122   :  { %v946_v58 = vadd.f32 %v945_v57, %v944_v56 }
 0x124   :  { %v947_v59 = vmul.f32 0.0078125, %v946_v58  ;;  %964 = vst [vmem:[#allocation5] sm:$0x1] %v946_v58 }
 0x126   :  { %v948_v60 = vsub.f32 %v1458_v48, %v947_v59  ;;  %v949_v1 = vsub.f32 %v1460_v49, %v947_v59  ;;  %v950_v2 = vsub.f32 %v1464_v63, %v947_v59  ;;  %v951_v5 = vsub.f32 %v1466_v0, %v947_v59 }
 0x127   :  { %v952_v6 = vsub.f32 %v1470_v15, %v947_v59  ;;  %v953_v9 = vsub.f32 %v1472_v16, %v947_v59  ;;  %v954_v12 = vsub.f32 %v1476_v29, %v947_v59  ;;  %v955_v49 = vsub.f32 %v1478_v30, %v947_v59 }
 0x128   :  { %v965_v3 = vmul.f32 %v948_v60, %v948_v60  ;;  %v966_v4 = vmul.f32 %v949_v1, %v949_v1  ;;  %v967_v7 = vmul.f32 %v950_v2, %v950_v2  ;;  %v968_v10 = vmul.f32 %v951_v5, %v951_v5 }
 0x129   :  { %v969_v14 = vmul.f32 %v952_v6, %v952_v6  ;;  %v970_v17 = vmul.f32 %v953_v9, %v953_v9  ;;  %v956_v18 = vsub.f32 %v1482_v44, %v947_v59  ;;  %v971_v19 = vmul.f32 %v954_v12, %v954_v12 }
 0x12a   :  { %v981_v8 = vadd.f32 %v966_v4, %v965_v3  ;;  %v957_v15 = vsub.f32 %v1484_v45, %v947_v59  ;;  %v972_v21 = vmul.f32 %v955_v49, %v955_v49  ;;  %v958_v16 = vsub.f32 %v1488_v61, %v947_v59 }
 0x12b   :  { %v973_v25 = vmul.f32 %v956_v18, %v956_v18  ;;  %v959_v29 = vsub.f32 %v1490_v62, %v947_v59  ;;  %v960_v30 = vsub.f32 %v1501_v22, %v947_v59  ;;  %v961_v44 = vsub.f32 %v1503_v24, %v947_v59 }
 0x12c   :  { %v982_v11 = vadd.f32 %v981_v8, %v967_v7  ;;  %v974_v27 = vmul.f32 %v957_v15, %v957_v15  ;;  %v975_v20 = vmul.f32 %v958_v16, %v958_v16  ;;  %v962_v33 = vsub.f32 %v924_v39, %v947_v59 }
 0x12d   :  { %v976_v31 = vmul.f32 %v959_v29, %v959_v29  ;;  %v977_v45 = vmul.f32 %v960_v30, %v960_v30  ;;  %v963_v35 = vsub.f32 %v925_v51, %v947_v59  ;;  %v978_v36 = vmul.f32 %v961_v44, %v961_v44 }
 0x12e   :  { %v983_v48 = vadd.f32 %v982_v11, %v968_v10  ;;  %v979_v37 = vmul.f32 %v962_v33, %v962_v33 }
 0x12f   :  { %v980_v40 = vmul.f32 %v963_v35, %v963_v35 }
 0x130   :  { %v984_v63 = vadd.f32 %v983_v48, %v969_v14 }
 0x132   :  { %v985_v0 = vadd.f32 %v984_v63, %v970_v17 }
 0x134   :  { %v986_v23 = vadd.f32 %v985_v0, %v971_v19 }
 0x136   :  { %v987_v26 = vadd.f32 %v986_v23, %v972_v21 }
 0x138   :  { %v988_v13 = vadd.f32 %v987_v26, %v973_v25 }
 0x13a   :  { %v989_v28 = vadd.f32 %v988_v13, %v974_v27 }
 0x13c   :  { %v990_v32 = vadd.f32 %v989_v28, %v975_v20 }
 0x13e   :  { %v991_v34 = vadd.f32 %v990_v32, %v976_v31 }
 0x140   :  { %v992_v61 = vadd.f32 %v991_v34, %v977_v45 }
 0x142   :  { %v993_v38 = vadd.f32 %v992_v61, %v978_v36 }
 0x144   :  { %v994_v62 = vadd.f32 %v993_v38, %v979_v37 }
 0x146   :  { %v995_v41 = vadd.f32 %v994_v62, %v980_v40 }
 0x148   :  { %v996_v42 = vrot.slane %v995_v41, 4 }
 0x14a   :  { %v997_v43 = vadd.f32 %v996_v42, %v995_v41 }
 0x14c   :  { %v998_v22 = vrot.slane %v997_v43, 2 }
 0x14e   :  { %v999_v46 = vadd.f32 %v998_v22, %v997_v43 }
 0x150   :  { %v1000_v24 = vrot.slane %v999_v46, 1 }
 0x152   :  { %v1001_v39 = vadd.f32 %v1000_v24, %v999_v46 }
 0x154   :  { %1002 = vst [vmem:[#allocation5 + $0x1] sm:$0x1] %v1001_v39 }
 0x155   :  { %1065 = dma.vmem_to_hbm [thread:$0]  %s1061_s14, 32, %s1063_s17, [#allocation6]  }
 0x156   :  { %1237 = dma.done.wait [#allocation4], 1024  }
 0x157   :  { %1238 = vsyncadd [#allocation4], 4294966272 }
 0x158   :  { %1239 = dma.done.wait [#allocation6], 32  }
 0x159   :  { %1240 = vsyncadd [#allocation6], 4294967264 }
 0x15a   :  { %1074 = vsyncpa [#allocation4], 1 }
 0x15b   :  { %1075 = vsyncpa [#allocation6], 1 }

</bundles_post_ra>
